<compile_context>
chip_gen: v5e
topology: v5e:2x2
jax: 0.10.0
libtpu: 0.0.40
codegen_flags: <defaults>
</compile_context>

<pallas_src>
import functools

import jax
import jax.numpy as jnp
from jax import lax
from jax.experimental import pallas as pl
from jax.experimental.pallas import tpu as pltpu

LANE_PAD = 128            # every feature/channel dim padded to one lane tile
ONES_LANE = LANE_PAD - 1  # activation lane pinned to 1.0 (feeds folded att cols)
NEG_SLOPE = 0.2
_FUSED_MAX_N = 1024       # above this node count, use the row-tiled path


def _round_up(a, m):
    return ((a + m - 1) // m) * m


def _clamp_vmem(est_bytes):
    return int(min(max(est_bytes, 32 * 1024 * 1024), 128 * 1024 * 1024))


def _bf16_scores_default():
    # bf16 VPU/EUP exists on v6e / v7x but not v5e -> only enable there.
    try:
        kind = jax.devices()[0].device_kind.lower()
    except Exception:
        return False
    return ("v6" in kind) or ("v7" in kind)


# ---------------------------------------------------------------------------
# Shared per-layer attention math (runs on VMEM-resident values)
# ---------------------------------------------------------------------------
def _attention_layer(mask, h_rows, hs_all, h_all, b, *, bf16_scores, apply_elu):
    """mask:[M,S] bool; h_rows:[M,128]; hs_all,h_all:[S,128]; b:[1,128]."""
    # e[i, j] = a_dst[i] + a_src[j]  via one NT matmul (no transposes):
    #   h  cols: [features | a_dst | 1 | 0...] ; hs cols: [0... | 1 | a_src | 0...]
    e = lax.dot_general(h_rows.astype(jnp.bfloat16), hs_all.astype(jnp.bfloat16),
                        (((1,), (1,)), ((), ())),
                        preferred_element_type=jnp.float32)            # [M, S]
    e = jnp.maximum(e, NEG_SLOPE * e)            # LeakyReLU, slope in (0,1)
    e = jnp.where(mask, e, jnp.float32(-1e30))   # mask non-edges once
    e_max = jnp.max(e, axis=-1, keepdims=True)
    s = e - e_max
    if bf16_scores:
        p = jnp.exp(s.astype(jnp.bfloat16))      # bf16 EUP exp (v6e/v7x)
        denom = jnp.sum(p.astype(jnp.float32), axis=-1, keepdims=True)
    else:
        p = jnp.exp(s)                           # masked entries underflow to 0
        denom = jnp.sum(p, axis=-1, keepdims=True)
    # Un-normalized aggregate, then scale by 1/denom (EUP reciprocal) --
    # cheaper than normalizing the whole [M,S] score tile.
    agg = jnp.dot(p.astype(jnp.bfloat16), h_all.astype(jnp.bfloat16),
                  preferred_element_type=jnp.float32)                   # [M,128]
    out = agg * pl.reciprocal(denom, approx=True) + b
    if apply_elu:
        out = jnp.where(out > 0, out, jnp.exp(jnp.minimum(out, 0.0)) - 1.0)
    return out


# ---------------------------------------------------------------------------
# Kernels
# ---------------------------------------------------------------------------
def _gat_fused_kernel(*refs, num_layers, bf16_scores):
    """Whole forward pass in one call (small graphs, everything VMEM-resident).

    refs = (x, adj, [w_ext, ws_ext, b_ext] * num_layers, out)
    """
    x_ref, adj_ref = refs[0], refs[1]
    out_ref = refs[2 + 3 * num_layers]
    mask = adj_ref[...] != 0
    x = x_ref[...]
    for li in range(num_layers):
        w = refs[2 + 3 * li][...]      # [128,128] bf16
        ws = refs[3 + 3 * li][...]     # [128,128] bf16
        b = refs[4 + 3 * li][...]      # [1,128]   f32
        xb = x.astype(jnp.bfloat16)
        h = jnp.dot(xb, w, preferred_element_type=jnp.float32)    # [N,128]
        hs = jnp.dot(xb, ws, preferred_element_type=jnp.float32)  # [N,128]
        x = _attention_layer(mask, h, hs, h, b, bf16_scores=bf16_scores,
                             apply_elu=(li < num_layers - 1))
    out_ref[...] = x.astype(out_ref.dtype)


def _gat_precompute_kernel(x_ref, w_ref, ws_ref, h_ref, hs_ref):
    """Tiled path, pass A: h / hs for ALL nodes, once per layer (bf16 out)."""
    xb = x_ref[...].astype(jnp.bfloat16)
    h_ref[...] = jnp.dot(xb, w_ref[...],
                         preferred_element_type=jnp.float32).astype(h_ref.dtype)
    hs_ref[...] = jnp.dot(xb, ws_ref[...],
                          preferred_element_type=jnp.float32).astype(hs_ref.dtype)


def _gat_attend_kernel(adj_ref, htile_ref, hs_ref, h_ref, b_ref, o_ref, *,
                       bf16_scores, apply_elu):
    """Tiled path, pass B: attention + aggregation for one target-row tile."""
    mask = adj_ref[...] != 0                                   # [TM, Np]
    out = _attention_layer(mask, htile_ref[...], hs_ref[...], h_ref[...],
                           b_ref[...], bf16_scores=bf16_scores,
                           apply_elu=apply_elu)
    o_ref[...] = out.astype(o_ref.dtype)


# ---------------------------------------------------------------------------
# pallas_call wrappers
# ---------------------------------------------------------------------------
def _gat_fused_call(x_pad, adj_pad, ext_params, bf16_scores):
    n = x_pad.shape[0]
    num_layers = len(ext_params)
    kernel = functools.partial(_gat_fused_kernel, num_layers=num_layers,
                               bf16_scores=bf16_scores)
    args = [x_pad, adj_pad]
    for w_ext, ws_ext, b_ext in ext_params:
        args += [w_ext, ws_ext, b_ext]

    flops = num_layers * (4 * n * LANE_PAD * LANE_PAD + 4 * n * n * LANE_PAD)
    transcendentals = num_layers * (n * n + n) + (num_layers - 1) * n * LANE_PAD
    bytes_accessed = (n * n + 2 * n * LANE_PAD * 4
                      + num_layers * (2 * LANE_PAD * LANE_PAD * 2 + LANE_PAD * 4))
    vmem_est = (n * n * 14 + 10 * n * LANE_PAD * 4
                + num_layers * (2 * LANE_PAD * LANE_PAD * 2) + (4 << 20))
    return pl.pallas_call(
        kernel,
        out_shape=jax.ShapeDtypeStruct((n, LANE_PAD), jnp.float32),
        compiler_params=pltpu.CompilerParams(
            vmem_limit_bytes=_clamp_vmem(vmem_est)),
        cost_estimate=pl.CostEstimate(flops=flops,
                                      transcendentals=transcendentals,
                                      bytes_accessed=bytes_accessed),
    )(*args)


def _adj_block_spec(tile_m, n_src):
    index_map = lambda i: (i, 0)
    try:
        # 3-deep buffering on the only O(N^2) HBM stream.
        return pl.BlockSpec((tile_m, n_src), index_map,
                            pipeline_mode=pl.Buffered(3))
    except TypeError:   # pipeline_mode not supported in this JAX version
        return pl.BlockSpec((tile_m, n_src), index_map)


def _gat_tiled_call(x_pad, adj_pad, ext_params, bf16_scores, tile_m):
    np_ = x_pad.shape[0]
    num_tiles = np_ // tile_m
    num_layers = len(ext_params)
    x = x_pad
    for li, (w_ext, ws_ext, b_ext) in enumerate(ext_params):
        # Pass A: x @ W done exactly once per layer, stored bf16 in HBM.
        h_bf, hs_bf = pl.pallas_call(
            _gat_precompute_kernel,
            out_shape=(jax.ShapeDtypeStruct((np_, LANE_PAD), jnp.bfloat16),
                       jax.ShapeDtypeStruct((np_, LANE_PAD), jnp.bfloat16)),
            compiler_params=pltpu.CompilerParams(
                vmem_limit_bytes=_clamp_vmem(8 * np_ * LANE_PAD * 4 + (4 << 20))),
        )(x, w_ext, ws_ext)

        # Pass B: target rows tiled; independent tiles -> "parallel" grid.
        kernel = functools.partial(_gat_attend_kernel, bf16_scores=bf16_scores,
                                   apply_elu=(li < num_layers - 1))
        flops = 4 * np_ * np_ * LANE_PAD
        transcendentals = np_ * np_ + np_
        bytes_accessed = np_ * np_ + 6 * np_ * LANE_PAD
        vmem_est = (tile_m * np_ * 19 + 4 * np_ * LANE_PAD * 2
                    + 8 * tile_m * LANE_PAD * 4 + (4 << 20))
        x = pl.pallas_call(
            kernel,
            out_shape=jax.ShapeDtypeStruct((np_, LANE_PAD), jnp.float32),
            grid=(num_tiles,),
            in_specs=[
                _adj_block_spec(tile_m, np_),                          # adj tile
                pl.BlockSpec((tile_m, LANE_PAD), lambda i: (i, 0)),    # h (targets)
                pl.BlockSpec((np_, LANE_PAD), lambda i: (0, 0)),       # hs (all, resident)
                pl.BlockSpec((np_, LANE_PAD), lambda i: (0, 0)),       # h  (all, resident)
                pl.BlockSpec((1, LANE_PAD), lambda i: (0, 0)),         # bias
            ],
            out_specs=pl.BlockSpec((tile_m, LANE_PAD), lambda i: (i, 0)),
            compiler_params=pltpu.CompilerParams(
                dimension_semantics=("parallel",),
                vmem_limit_bytes=_clamp_vmem(vmem_est)),
            cost_estimate=pl.CostEstimate(flops=flops,
                                          transcendentals=transcendentals,
                                          bytes_accessed=bytes_accessed),
        )(adj_pad, h_bf, hs_bf, h_bf, b_ext)
    return x


# ---------------------------------------------------------------------------
# Parameter folding / forward wrapper
# ---------------------------------------------------------------------------
def build_ext_params(params):
    """Fold att vectors into two lane-padded weight matrices per layer.

    h  = x @ w_ext : cols [0,c)=W x, col c = a_dst, col c+1 = 1, rest 0
    hs = x @ ws_ext: col c = 1, col c+1 = a_src, rest 0
    => e = h @ hs^T gives e[i,j] = a_dst[i] + a_src[j] with one NT matmul.
    The constant 1s come from the activation ones lane (lane 127), re-armed
    every layer through the bias.
    """
    ext = []
    for (w, att_src, att_dst, bias) in params:
        fin, c = w.shape
        assert fin <= ONES_LANE and c + 2 <= ONES_LANE, \
            "channel count too large for 128-lane folding"
        w_ext = jnp.zeros((LANE_PAD, LANE_PAD), jnp.float32)
        w_ext = w_ext.at[:fin, :c].set(w)
        w_ext = w_ext.at[:fin, c].set((w @ att_dst.reshape(c, 1))[:, 0])
        w_ext = w_ext.at[ONES_LANE, c + 1].set(1.0)
        ws_ext = jnp.zeros((LANE_PAD, LANE_PAD), jnp.float32)
        ws_ext = ws_ext.at[ONES_LANE, c].set(1.0)
        ws_ext = ws_ext.at[:fin, c + 1].set((w @ att_src.reshape(c, 1))[:, 0])
        b_ext = jnp.zeros((1, LANE_PAD), jnp.float32)
        b_ext = b_ext.at[0, :c].set(bias)
        b_ext = b_ext.at[0, ONES_LANE].set(1.0)    # re-arm ones lane
        ext.append((w_ext.astype(jnp.bfloat16), ws_ext.astype(jnp.bfloat16), b_ext))
    return ext


def gat_forward(x, adj, params, *, tile_m=256, force_tiled=None):
    """Matches GAT.forward: GATConv -> elu between layers, last layer plain."""
    n, fin = x.shape
    channels = tuple(int(w.shape[1]) for (w, _s, _d, _b) in params)
    use_tiled = (n > _FUSED_MAX_N) if force_tiled is None else bool(force_tiled)
    bf16_scores = _bf16_scores_default()
    ext_params = build_ext_params(params)

    if use_tiled:
        assert tile_m % 128 == 0, "tile_m must be a multiple of 128"
        np_ = _round_up(n, tile_m)
    else:
        np_ = _round_up(n, 8)

    x_pad = jnp.zeros((np_, LANE_PAD), jnp.float32)
    x_pad = x_pad.at[:n, :fin].set(x.astype(jnp.float32))
    x_pad = x_pad.at[:, ONES_LANE].set(1.0)          # constant-1 lane
    adj_pad = jnp.zeros((np_, np_), jnp.int8).at[:n, :n].set(adj.astype(jnp.int8))

    if use_tiled:
        out_pad = _gat_tiled_call(x_pad, adj_pad, ext_params, bf16_scores, tile_m)
    else:
        out_pad = _gat_fused_call(x_pad, adj_pad, ext_params, bf16_scores)
    return out_pad[:n, :channels[-1]]


# ---------------------------------------------------------------------------
# Parameters / graph construction / pure-JAX reference
# ---------------------------------------------------------------------------
def init_gat_params(key, num_features, hidden_channels, out_channels,
                    num_heads=1, num_layers=2):
    """Deterministic synthetic parameters (heads=1, the module default)."""
    assert num_heads == 1, "kernel implemented for the module default num_heads=1"
    dims = [num_features] + [hidden_channels] * (num_layers - 1) + [out_channels]
    params = []
    for li in range(num_layers):
        fin, fout = dims[li], dims[li + 1]
        key, k_w, k_s, k_d = jax.random.split(key, 4)
        scale = 1.0 / jnp.sqrt(jnp.float32(fin))
        w = jax.random.normal(k_w, (fin, fout), jnp.float32) * scale
        att_src = jax.random.normal(k_s, (1, fout), jnp.float32) * 0.1
        att_dst = jax.random.normal(k_d, (1, fout), jnp.float32) * 0.1
        bias = jnp.zeros((fout,), jnp.float32)     # PyG initializes bias to 0
        params.append((w, att_src, att_dst, bias))
    return params


def edge_index_to_dense_adj(edge_index, num_nodes):
    """int8 adj[target, source] = 1 per edge source->target, plus self-loops."""
    src, tgt = edge_index[0], edge_index[1]
    adj = jnp.zeros((num_nodes, num_nodes), jnp.int8)
    adj = adj.at[tgt, src].set(jnp.int8(1))
    adj = jnp.maximum(adj, jnp.eye(num_nodes, dtype=jnp.int8))
    return adj


def gat_reference(x, adj, params, neg_slope=0.2):
    """Pure-JAX f32 reference of the PyG GATConv stack (heads=1)."""
    a = adj != 0
    h_in = x.astype(jnp.float32)
    num_layers = len(params)
    for li, (w, att_src, att_dst, bias) in enumerate(params):
        h = h_in @ w
        a_src = h @ att_src.reshape(-1, 1)
        a_dst = h @ att_dst.reshape(-1, 1)
        e = a_dst + a_src.T
        e = jnp.where(e > 0, e, neg_slope * e)
        e = jnp.where(a, e, -jnp.inf)
        alpha = jax.nn.softmax(e, axis=-1)
        out = alpha @ h + bias.reshape(1, -1)
        if li < num_layers - 1:
            out = jax.nn.elu(out)
        h_in = out
    return h_in


# ---------------------------------------------------------------------------
# Demo / smoke test
# ---------------------------------------------------------------------------
if __name__ == "__main__":
    # TODO(synk): multi-head attention (num_heads > 1) not implemented;
    # the module default heads=1 is what the kernel covers.
    key = jax.random.PRNGKey(0)
    num_features, hidden_channels, out_channels, num_layers = 8, 16, 4, 2

    key, kp = jax.random.split(key)
    params = init_gat_params(kp, num_features, hidden_channels, out_channels,
                             num_heads=1, num_layers=num_layers)

    # Small graph -> fused single-block kernel.
    key, kx1, ke1 = jax.random.split(key, 3)
    n1, e1 = 16, 40
    x1 = jax.random.normal(kx1, (n1, num_features), jnp.float32)
    ei1 = jax.random.randint(ke1, (2, e1), 0, n1, dtype=jnp.int32)
    adj1 = edge_index_to_dense_adj(ei1, n1)
    out1 = jax.block_until_ready(gat_forward(x1, adj1, params))
    ref1 = gat_reference(x1, adj1, params)
    assert out1.shape == (n1, out_channels)
    assert bool(jnp.all(jnp.isfinite(out1)))
    assert float(jnp.max(jnp.abs(out1 - ref1))) < 0.2

    # Larger graph -> row-tiled two-pass path (exercises the parallel grid).
    key, kx2, ke2 = jax.random.split(key, 3)
    n2, e2 = 256, 1024
    x2 = jax.random.normal(kx2, (n2, num_features), jnp.float32)
    ei2 = jax.random.randint(ke2, (2, e2), 0, n2, dtype=jnp.int32)
    adj2 = edge_index_to_dense_adj(ei2, n2)
    out2 = jax.block_until_ready(
        gat_forward(x2, adj2, params, force_tiled=True, tile_m=128))
    ref2 = gat_reference(x2, adj2, params)
    assert out2.shape == (n2, out_channels)
    assert bool(jnp.all(jnp.isfinite(out2)))
    assert float(jnp.max(jnp.abs(out2 - ref2))) < 0.2

    print("KERNEL_OK")
</pallas_src>

<mosaic_0001>
module attributes {stable_mosaic.version = 11 : i64} {
  func.func @_gat_fused_kernel(%arg0: memref<16x128xf32, #tpu.memory_space<vmem>>, %arg1: memref<16x16xi8, #tpu.memory_space<vmem>>, %arg2: memref<128x128xbf16, #tpu.memory_space<vmem>>, %arg3: memref<128x128xbf16, #tpu.memory_space<vmem>>, %arg4: memref<1x128xf32, #tpu.memory_space<vmem>>, %arg5: memref<128x128xbf16, #tpu.memory_space<vmem>>, %arg6: memref<128x128xbf16, #tpu.memory_space<vmem>>, %arg7: memref<1x128xf32, #tpu.memory_space<vmem>>, %arg8: memref<16x128xf32, #tpu.memory_space<vmem>>) attributes {dimension_semantics = [], scalar_prefetch = 0 : i64, scratch_operands = 0 : i64, tpu.core_type = #tpu.core_type<tc>} {
    %c0 = arith.constant 0 : index
    %c0_0 = arith.constant 0 : index
    %0 = vector.load %arg1[%c0, %c0_0] : memref<16x16xi8, #tpu.memory_space<vmem>>, vector<16x16xi8>
    %c0_i8 = arith.constant 0 : i8
    %1 = vector.broadcast %c0_i8 : i8 to vector<16x16xi8>
    %2 = arith.cmpi ne, %0, %1 : vector<16x16xi8>
    %c0_1 = arith.constant 0 : index
    %c0_2 = arith.constant 0 : index
    %3 = vector.load %arg0[%c0_1, %c0_2] : memref<16x128xf32, #tpu.memory_space<vmem>>, vector<16x128xf32>
    %c0_3 = arith.constant 0 : index
    %c0_4 = arith.constant 0 : index
    %4 = vector.load %arg2[%c0_3, %c0_4] : memref<128x128xbf16, #tpu.memory_space<vmem>>, vector<128x128xbf16>
    %c0_5 = arith.constant 0 : index
    %c0_6 = arith.constant 0 : index
    %5 = vector.load %arg3[%c0_5, %c0_6] : memref<128x128xbf16, #tpu.memory_space<vmem>>, vector<128x128xbf16>
    %c0_7 = arith.constant 0 : index
    %c0_8 = arith.constant 0 : index
    %6 = vector.load %arg4[%c0_7, %c0_8] : memref<1x128xf32, #tpu.memory_space<vmem>>, vector<1x128xf32>
    %7 = arith.truncf %3 : vector<16x128xf32> to vector<16x128xbf16>
    %cst = arith.constant dense<0.000000e+00> : vector<16x128xf32>
    %8 = tpu.matmul %7, %4, %cst {dimension_numbers = #tpu.dot_dimension_numbers<[1], [0], [0], [1], [0, 0, 1, 1], [], []>} : vector<16x128xbf16>, vector<128x128xbf16>, vector<16x128xf32> -> vector<16x128xf32>
    %cst_9 = arith.constant dense<0.000000e+00> : vector<16x128xf32>
    %9 = tpu.matmul %7, %5, %cst_9 {dimension_numbers = #tpu.dot_dimension_numbers<[1], [0], [0], [1], [0, 0, 1, 1], [], []>} : vector<16x128xbf16>, vector<128x128xbf16>, vector<16x128xf32> -> vector<16x128xf32>
    %10 = arith.truncf %8 : vector<16x128xf32> to vector<16x128xbf16>
    %11 = arith.truncf %9 : vector<16x128xf32> to vector<16x128xbf16>
    %cst_10 = arith.constant dense<0.000000e+00> : vector<16x16xf32>
    %12 = tpu.matmul %10, %11, %cst_10 {dimension_numbers = #tpu.dot_dimension_numbers<[1], [1], [0], [0], [0, 0, 1, 0], [], []>} : vector<16x128xbf16>, vector<16x128xbf16>, vector<16x16xf32> -> vector<16x16xf32>
    %cst_11 = arith.constant 2.000000e-01 : f32
    %13 = vector.broadcast %cst_11 : f32 to vector<16x16xf32>
    %14 = arith.mulf %13, %12 : vector<16x16xf32>
    %15 = arith.maximumf %12, %14 : vector<16x16xf32>
    %cst_12 = arith.constant -1.000000e+30 : f32
    %16 = vector.broadcast %cst_12 : f32 to vector<16x16xf32>
    %17 = arith.select %2, %15, %16 : vector<16x16xi1>, vector<16x16xf32>
    %cst_13 = arith.constant dense<0xFF800000> : vector<16xf32>
    %18 = vector.multi_reduction <maximumf>, %17, %cst_13 [1] : vector<16x16xf32> to vector<16xf32>
    %19 = vector.shape_cast %18 : vector<16xf32> to vector<16x1xf32>
    %20 = vector.broadcast %19 : vector<16x1xf32> to vector<16x16xf32>
    %21 = arith.subf %17, %20 : vector<16x16xf32>
    %22 = math.exp %21 : vector<16x16xf32>
    %cst_14 = arith.constant dense<0.000000e+00> : vector<16xf32>
    %23 = vector.multi_reduction <add>, %22, %cst_14 [1] : vector<16x16xf32> to vector<16xf32>
    %24 = vector.shape_cast %23 : vector<16xf32> to vector<16x1xf32>
    %25 = arith.truncf %22 : vector<16x16xf32> to vector<16x16xbf16>
    %26 = arith.truncf %8 : vector<16x128xf32> to vector<16x128xbf16>
    %cst_15 = arith.constant dense<0.000000e+00> : vector<16x128xf32>
    %27 = tpu.matmul %25, %26, %cst_15 {dimension_numbers = #tpu.dot_dimension_numbers<[1], [0], [0], [1], [0, 0, 1, 1], [], []>} : vector<16x16xbf16>, vector<16x128xbf16>, vector<16x128xf32> -> vector<16x128xf32>
    %28 = tpu.reciprocal %24 {approx = true} : vector<16x1xf32> -> vector<16x1xf32>
    %29 = vector.broadcast %28 : vector<16x1xf32> to vector<16x128xf32>
    %30 = arith.mulf %27, %29 : vector<16x128xf32>
    %31 = vector.broadcast %6 : vector<1x128xf32> to vector<16x128xf32>
    %32 = arith.addf %30, %31 : vector<16x128xf32>
    %cst_16 = arith.constant 0.000000e+00 : f32
    %33 = vector.broadcast %cst_16 : f32 to vector<16x128xf32>
    %34 = arith.cmpf ogt, %32, %33 : vector<16x128xf32>
    %cst_17 = arith.constant 0.000000e+00 : f32
    %35 = vector.broadcast %cst_17 : f32 to vector<16x128xf32>
    %36 = arith.minimumf %32, %35 : vector<16x128xf32>
    %37 = math.exp %36 : vector<16x128xf32>
    %cst_18 = arith.constant 1.000000e+00 : f32
    %38 = vector.broadcast %cst_18 : f32 to vector<16x128xf32>
    %39 = arith.subf %37, %38 : vector<16x128xf32>
    %40 = arith.select %34, %32, %39 : vector<16x128xi1>, vector<16x128xf32>
    %c0_19 = arith.constant 0 : index
    %c0_20 = arith.constant 0 : index
    %41 = vector.load %arg5[%c0_19, %c0_20] : memref<128x128xbf16, #tpu.memory_space<vmem>>, vector<128x128xbf16>
    %c0_21 = arith.constant 0 : index
    %c0_22 = arith.constant 0 : index
    %42 = vector.load %arg6[%c0_21, %c0_22] : memref<128x128xbf16, #tpu.memory_space<vmem>>, vector<128x128xbf16>
    %c0_23 = arith.constant 0 : index
    %c0_24 = arith.constant 0 : index
    %43 = vector.load %arg7[%c0_23, %c0_24] : memref<1x128xf32, #tpu.memory_space<vmem>>, vector<1x128xf32>
    %44 = arith.truncf %40 : vector<16x128xf32> to vector<16x128xbf16>
    %cst_25 = arith.constant dense<0.000000e+00> : vector<16x128xf32>
    %45 = tpu.matmul %44, %41, %cst_25 {dimension_numbers = #tpu.dot_dimension_numbers<[1], [0], [0], [1], [0, 0, 1, 1], [], []>} : vector<16x128xbf16>, vector<128x128xbf16>, vector<16x128xf32> -> vector<16x128xf32>
    %cst_26 = arith.constant dense<0.000000e+00> : vector<16x128xf32>
    %46 = tpu.matmul %44, %42, %cst_26 {dimension_numbers = #tpu.dot_dimension_numbers<[1], [0], [0], [1], [0, 0, 1, 1], [], []>} : vector<16x128xbf16>, vector<128x128xbf16>, vector<16x128xf32> -> vector<16x128xf32>
    %47 = arith.truncf %45 : vector<16x128xf32> to vector<16x128xbf16>
    %48 = arith.truncf %46 : vector<16x128xf32> to vector<16x128xbf16>
    %cst_27 = arith.constant dense<0.000000e+00> : vector<16x16xf32>
    %49 = tpu.matmul %47, %48, %cst_27 {dimension_numbers = #tpu.dot_dimension_numbers<[1], [1], [0], [0], [0, 0, 1, 0], [], []>} : vector<16x128xbf16>, vector<16x128xbf16>, vector<16x16xf32> -> vector<16x16xf32>
    %cst_28 = arith.constant 2.000000e-01 : f32
    %50 = vector.broadcast %cst_28 : f32 to vector<16x16xf32>
    %51 = arith.mulf %50, %49 : vector<16x16xf32>
    %52 = arith.maximumf %49, %51 : vector<16x16xf32>
    %cst_29 = arith.constant -1.000000e+30 : f32
    %53 = vector.broadcast %cst_29 : f32 to vector<16x16xf32>
    %54 = arith.select %2, %52, %53 : vector<16x16xi1>, vector<16x16xf32>
    %cst_30 = arith.constant dense<0xFF800000> : vector<16xf32>
    %55 = vector.multi_reduction <maximumf>, %54, %cst_30 [1] : vector<16x16xf32> to vector<16xf32>
    %56 = vector.shape_cast %55 : vector<16xf32> to vector<16x1xf32>
    %57 = vector.broadcast %56 : vector<16x1xf32> to vector<16x16xf32>
    %58 = arith.subf %54, %57 : vector<16x16xf32>
    %59 = math.exp %58 : vector<16x16xf32>
    %cst_31 = arith.constant dense<0.000000e+00> : vector<16xf32>
    %60 = vector.multi_reduction <add>, %59, %cst_31 [1] : vector<16x16xf32> to vector<16xf32>
    %61 = vector.shape_cast %60 : vector<16xf32> to vector<16x1xf32>
    %62 = arith.truncf %59 : vector<16x16xf32> to vector<16x16xbf16>
    %63 = arith.truncf %45 : vector<16x128xf32> to vector<16x128xbf16>
    %cst_32 = arith.constant dense<0.000000e+00> : vector<16x128xf32>
    %64 = tpu.matmul %62, %63, %cst_32 {dimension_numbers = #tpu.dot_dimension_numbers<[1], [0], [0], [1], [0, 0, 1, 1], [], []>} : vector<16x16xbf16>, vector<16x128xbf16>, vector<16x128xf32> -> vector<16x128xf32>
    %65 = tpu.reciprocal %61 {approx = true} : vector<16x1xf32> -> vector<16x1xf32>
    %66 = vector.broadcast %65 : vector<16x1xf32> to vector<16x128xf32>
    %67 = arith.mulf %64, %66 : vector<16x128xf32>
    %68 = vector.broadcast %43 : vector<1x128xf32> to vector<16x128xf32>
    %69 = arith.addf %67, %68 : vector<16x128xf32>
    %c0_33 = arith.constant 0 : index
    %c0_34 = arith.constant 0 : index
    %70 = vector.load %arg8[%c0_33, %c0_34] : memref<16x128xf32, #tpu.memory_space<vmem>>, vector<16x128xf32>
    tpu.vector_store %arg8[%c0_33, %c0_34], %69 {strides = array<i32>} : memref<16x128xf32, #tpu.memory_space<vmem>>, vector<16x128xf32>,
    return
  }
}

</mosaic_0001>

<bundles_post_ra>
// kernel: tpu_custom_call.1
= control target key start
LH: loop header
LB: loop body
LE: loop exit
PB: predicated region body
PF: predicated region fallthrough
CT: control target
= control target key end

     0   :  { %13 = vsyncpa [#allocation3], 0  ;;  %s1122_s0 = inlined_call_operand.hbm [shape: f32[16,128], index: 0, kind: input, shape index: {}]   ;;  %s1123_s1 = inlined_call_operand.hbm [shape: s8[16,16], index: 1, kind: input, shape index: {}]   ;;  %s1124_s2 = inlined_call_operand.hbm [shape: bf16[128,128], index: 2, kind: input, shape index: {}]   ;;  %s1125_s3 = inlined_call_operand.hbm [shape: bf16[128,128], index: 3, kind: input, shape index: {}]   ;;  %s1126_s4 = inlined_call_operand.vmem [shape: f32[1,128], index: 4, kind: input, shape index: {}]   ;;  %s1127_s5 = inlined_call_operand.hbm [shape: bf16[128,128], index: 5, kind: input, shape index: {}]   ;;  %s1128_s6 = inlined_call_operand.hbm [shape: bf16[128,128], index: 6, kind: input, shape index: {}]   ;;  %s1129_s7 = inlined_call_operand.vmem [shape: f32[1,128], index: 7, kind: input, shape index: {}]   ;;  %s1130_s8 = inlined_call_operand.hbm [shape: f32[16,128], index: 8, kind: output, shape index: {}]  }
   0x1   :  { %14 = vsyncpa [#allocation6], 0 }
   0x2   :  { %15 = vsyncpa [#allocation9], 0 }
   0x3   :  { %16 = vsyncpa [#allocation12], 0  ;;  %s35_s29 = sshll.u32 %s1123_s1, 4  ;;  %s36_s29 = int_to_ptr.hbm [resolvable:$true] %s35_s29 }
   0x4   :  { %17 = vsyncpa [#allocation4], 0  ;;  %s1004_s30 = smov [#allocation5]   ;;  %s1005_s10 = smov 32  }
   0x5   :  { %s37_s9 = sshll.u32 %s1004_s30, 4  ;;  %s1006_s11 = smov 2   ;;  %s38_s9 = int_to_ptr.vmem [resolvable:$true] %s37_s9 }
   0x6   :  { %43 = dma.hbm_to_vmem [thread:$0]  %s36_s29, 64, %s38_s9, [#allocation6], %s1005_s10, %s1005_s10, %s1006_s11  }
   0x7   :  { %s61_s14 = sshll.u32 %s1125_s3, 4  ;;  %s1007_s15 = smov [#allocation8]   ;;  %s62_s14 = int_to_ptr.hbm [resolvable:$true] %s61_s14 }
   0x8   :  { %s63_s16 = sshll.u32 %s1007_s15, 4  ;;  %s22_s19 = sshll.u32 %s1122_s0, 4  ;;  %s64_s16 = int_to_ptr.vmem [resolvable:$true] %s63_s16  ;;  %s23_s19 = int_to_ptr.hbm [resolvable:$true] %s22_s19 }
   0x9   :  { %s1008_s1 = smov 64   ;;  %s1009_s20 = smov 4  }
   0xa   :  { %69 = dma.hbm_to_vmem [thread:$0]  %s62_s14, 1024, %s64_s16, [#allocation9], %s1008_s1, %s1008_s1, %s1009_s20  }
   0xb   :  { %s1010_s21 = smov [#allocation2]   ;;  %s48_s25 = sshll.u32 %s1124_s2, 4  ;;  %s49_s25 = int_to_ptr.hbm [resolvable:$true] %s48_s25 }
   0xc   :  { %s24_s22 = sshll.u32 %s1010_s21, 4  ;;  %s1011_s3 = smov 128   ;;  %s25_s22 = int_to_ptr.vmem [resolvable:$true] %s24_s22 }
   0xd   :  { %s1012_s26 = smov 8   ;;  %s1013_s0 = smov [#allocation7]  }
   0xe   :  { %30 = dma.hbm_to_vmem [thread:$0]  %s23_s19, 256, %s25_s22, [#allocation3], %s1011_s3, %s1011_s3, %s1012_s26  }
   0xf   :  { %s50_s27 = sshll.u32 %s1013_s0, 4  ;;  %s76_s30 = sshll.u32 %s1127_s5, 4  ;;  %s51_s27 = int_to_ptr.vmem [resolvable:$true] %s50_s27  ;;  %s77_s30 = int_to_ptr.hbm [resolvable:$true] %s76_s30 }
  0x10   :  { %56 = dma.hbm_to_vmem [thread:$0]  %s49_s25, 1024, %s51_s27, [#allocation6], %s1008_s1, %s1008_s1, %s1009_s20  }
  0x11   :  { %s89_s2 = sshll.u32 %s1128_s6, 4  ;;  %s1014_s11 = smov [#allocation10]   ;;  %s90_s2 = int_to_ptr.hbm [resolvable:$true] %s89_s2 }
  0x12   :  { %s78_s12 = sshll.u32 %s1014_s11, 4  ;;  %s1015_s13 = smov [#allocation11]   ;;  %s79_s12 = int_to_ptr.vmem [resolvable:$true] %s78_s12 }
  0x13   :  { %84 = dma.hbm_to_vmem [thread:$0]  %s77_s30, 1024, %s79_s12, [#allocation9], %s1008_s1, %s1008_s1, %s1009_s20  }
  0x14   :  { %s91_s14 = sshll.u32 %s1015_s13, 4  ;;  %s92_s14 = int_to_ptr.vmem [resolvable:$true] %s91_s14 }
  0x15   :  { %97 = dma.hbm_to_vmem [thread:$0]  %s90_s2, 1024, %s92_s14, [#allocation12], %s1008_s1, %s1008_s1, %s1009_s20  }
  0x16   :  { %994 = dma.done.wait [#allocation3], 256  }
  0x17   :  { %995 = vsyncadd [#allocation3], 4294967040 }
  0x18   :  { %996 = dma.done.wait [#allocation6], 1088  }
  0x19   :  { %997 = vsyncadd [#allocation6], 4294966208 }
  0x1a   :  { %998 = dma.done.wait [#allocation9], 2048  }
  0x1b   :  { %999 = vsyncadd [#allocation9], 4294965248 }
  0x1c   :  { %1000 = dma.done.wait [#allocation12], 1024  }
  0x1d   :  { %1001 = vsyncadd [#allocation12], 4294966272  ;;  %v765_v0 = vld [vmem:[#allocation7 + $0x38] sm:$0xff]  ;;  %v764_v2 = vld [vmem:[#allocation7 + $0x30] sm:$0xff]  ;;  %v1016_v26 = vmov 0   ;;  %vm319_vm3 = vcmask 130048  }
  0x1e   :  { %v773_v1 = vld [vmem:[#allocation8 + $0x38] sm:$0xff]  ;;  %215 = vmatpush.bf16.msra.mxu0 %v765_v0  ;;  %v772_v3 = vld [vmem:[#allocation8 + $0x30] sm:$0xff]  ;;  %v763_v4 = vld [vmem:[#allocation7 + $0x28] sm:$0xff]  ;;  %s1017_s16 = smov [#allocation13]   ;;  %s610_s1 = sshll.u32 %s1130_s8, 4  ;;  %s611_s1 = int_to_ptr.hbm [resolvable:$true] %s610_s1 }
  0x1f   :  { %277 = vmatpush.bf16.msra.mxu1 %v773_v1  ;;  %v771_v5 = vld [vmem:[#allocation8 + $0x28] sm:$0xff]  ;;  %v762_v6 = vld [vmem:[#allocation7 + $0x20] sm:$0xff]  ;;  %v761_v8 = vld [vmem:[#allocation7 + $0x18] sm:$0xff]  ;;  %s608_s17 = sshll.u32 %s1017_s16, 4  ;;  %s609_s17 = int_to_ptr.vmem [resolvable:$true] %s608_s17 }
  0x20   :  { %v770_v7 = vld [vmem:[#allocation8 + $0x20] sm:$0xff]  ;;  %v769_v9 = vld [vmem:[#allocation8 + $0x18] sm:$0xff]  ;;  %v760_v10 = vld [vmem:[#allocation7 + $0x10] sm:$0xff] }
  0x21   :  { %v768_v11 = vld [vmem:[#allocation8 + $0x10] sm:$0xff]  ;;  %v759_v12 = vld [vmem:[#allocation7 + $0x8] sm:$0xff]  ;;  %v758_v14 = vld [vmem:[#allocation7] sm:$0xff] }
  0x22   :  { %216 = vmatpush.bf16.msra.mxu0 %v764_v2  ;;  %v767_v13 = vld [vmem:[#allocation8 + $0x8] sm:$0xff]  ;;  %v766_v15 = vld [vmem:[#allocation8] sm:$0xff]  ;;  %v132_v17 = vld [vmem:[#allocation2 + $0x8] sm:$0xff] }
  0x23   :  { %278 = vmatpush.bf16.msra.mxu1 %v772_v3  ;;  %v131_v16 = vld [vmem:[#allocation2] sm:$0xff]  ;;  %v127_v25 = vld [vmem:[#allocation5] sm:$0x3]  ;;  %v128_v28 = vld [vmem:[#allocation5 + $0x2] sm:$0x3] }
  0x24   :  { %v166_v18 = vpack.c.bf16 %v132_v17, %v131_v16  ;;  %vm129_vm0 = vnez %v127_v25  ;;  %vm130_vm1 = vnez %v128_v28  ;;  %v781_v55 = vld [vmem:[#allocation10 + $0x38] sm:$0xff]  ;;  %v780_v57 = vld [vmem:[#allocation10 + $0x30] sm:$0xff]  ;;  %v779_v59 = vld [vmem:[#allocation10 + $0x28] sm:$0xff] }
  0x25   :  { %v311_v27 = vsel %vm129_vm0, 16843009, %v1016_v26  ;;  %v312_v34 = vsel %vm130_vm1, 16843009, %v1016_v26  ;;  %v789_v56 = vld [vmem:[#allocation11 + $0x38] sm:$0xff]  ;;  %v788_v58 = vld [vmem:[#allocation11 + $0x30] sm:$0xff] }
  0x26   :  { %217 = vmatpush.bf16.msra.mxu0 %v763_v4  ;;  %v313_v29 = vunpack.c.0.s8 %v311_v27  ;;  %v314_v37 = vunpack.c.0.s8 %v312_v34  ;;  %v787_v60 = vld [vmem:[#allocation11 + $0x28] sm:$0xff]  ;;  %v778_v61 = vld [vmem:[#allocation10 + $0x20] sm:$0xff]  ;;  %v777_v63 = vld [vmem:[#allocation10 + $0x18] sm:$0xff] }
  0x27   :  { %279 = vmatpush.bf16.msra.mxu1 %v771_v5  ;;  %v786_v62 = vld [vmem:[#allocation11 + $0x20] sm:$0xff]  ;;  %v785_v0 = vld [vmem:[#allocation11 + $0x18] sm:$0xff]  ;;  %v776_v1 = vld [vmem:[#allocation10 + $0x10] sm:$0xff] }
  0x28   :  { %vm1084_vm2 = vcmp.ne.s32.totalorder %v313_v29, 0  ;;  %vm1091_vm4 = vcmp.ne.s32.totalorder %v314_v37, 0  ;;  %v784_v2 = vld [vmem:[#allocation11 + $0x10] sm:$0xff]  ;;  %v775_v3 = vld [vmem:[#allocation10 + $0x8] sm:$0xff] }
  0x29   :  { %v783_v4 = vld [vmem:[#allocation11 + $0x8] sm:$0xff] }
  0x2a   :  { %218 = vmatpush.bf16.msra.mxu0 %v762_v6  ;;  %v774_v6 = vld [vmem:[#allocation10] sm:$0xff] }
  0x2b   :  { %280 = vmatpush.bf16.msra.mxu1 %v770_v7  ;;  %v782_v7 = vld [vmem:[#allocation11] sm:$0xff] }
  0x2e   :  { %219 = vmatpush.bf16.msra.mxu0 %v761_v8 }
  0x2f   :  { %281 = vmatpush.bf16.msra.mxu1 %v769_v9  ;;  %v804_v9 = vld [vmem:[%s1126_s4] ss:$0 sm:$0xff] }
  0x32   :  { %220 = vmatpush.bf16.msra.mxu0 %v760_v10 }
  0x33   :  { %282 = vmatpush.bf16.msra.mxu1 %v768_v11 }
  0x36   :  { %221 = vmatpush.bf16.msra.mxu0 %v759_v12 }
  0x37   :  { %283 = vmatpush.bf16.msra.mxu1 %v767_v13 }
  0x3a   :  { %222 = vmatpush.bf16.msra.mxu0 %v758_v14 }
  0x3b   :  { %284 = vmatpush.bf16.msra.mxu1 %v766_v15 }
  0x3d   :  { %223 = vmatmul.bf16.vlgmr.msra.gmra.mxu0 %v166_v18 }
  0x3e   :  { %285 = vmatmul.bf16.vlgmr.msra.gmra.mxu1 %v166_v18 }
  0xba   :  { %v224_v19 = vpop.f32.mrf.mxu0 }
  0xbb   :  { %v286_v20 = vpop.f32.mrf.mxu1 }
  0xc2   :  { %v226_v21 = vpop.f32.mrf.mxu0 }
  0xc3   :  { %v288_v22 = vpop.f32.mrf.mxu1  ;;  %v291_v23 = vpack.c.bf16 %v226_v21, %v224_v19 }
  0xc4   :  { %v292_v24 = vpack.c.bf16 %v288_v22, %v286_v20 }
  0xc5   :  { %349 = vmatpush.bf16.msra.mxu3 %v291_v23 }
  0xc6   :  { %300 = vmatpush.bf16.xpose.msra.mxu2 %v292_v24 }
  0xc9   :  { %459 = vmatpush.bf16.msrb.mxu3 %v781_v55 }
  0xcd   :  { %301 = vmatmul.bf16.vlgmr.msra.gmra.mxu2 %v291_v23  ;;  %460 = vmatpush.bf16.msrb.mxu3 %v780_v57 }
  0xce   :  { %521 = vmatpush.bf16.msrb.mxu2 %v789_v56 }
  0xd1   :  { %461 = vmatpush.bf16.msrb.mxu3 %v779_v59 }
  0xd2   :  { %522 = vmatpush.bf16.msrb.mxu2 %v788_v58  ;;  %v805_v58 = vld [vmem:[%s1129_s7] ss:$0 sm:$0xff] }
  0xd5   :  { %462 = vmatpush.bf16.msrb.mxu3 %v778_v61 }
  0xd6   :  { %523 = vmatpush.bf16.msrb.mxu2 %v787_v60 }
  0xd9   :  { %463 = vmatpush.bf16.msrb.mxu3 %v777_v63 }
  0xda   :  { %524 = vmatpush.bf16.msrb.mxu2 %v786_v62 }
  0xdd   :  { %464 = vmatpush.bf16.msrb.mxu3 %v776_v1 }
  0xde   :  { %525 = vmatpush.bf16.msrb.mxu2 %v785_v0 }
  0xe1   :  { %465 = vmatpush.bf16.msrb.mxu3 %v775_v3 }
  0xe2   :  { %526 = vmatpush.bf16.msrb.mxu2 %v784_v2 }
  0xe5   :  { %466 = vmatpush.bf16.msrb.mxu3 %v774_v6 }
  0xe6   :  { %527 = vmatpush.bf16.msrb.mxu2 %v783_v4 }
  0xea   :  { %528 = vmatpush.bf16.msrb.mxu2 %v782_v7 }
 0x150   :  { %v302_v30 = vpop.f32.mrf.mxu2 }
 0x151   :  { %v307_v31 = vmul.f32 0.2, %v302_v30 }
 0x153   :  { %v309_v33 = vmax.f32 %v302_v30, %v307_v31 }
 0x155   :  { %v317_v35 = vsel %vm1084_vm2, %v309_v33, -1e+30 }
 0x156   :  { %v320_v36 = vsel %vm319_vm3, %v317_v35, -inf }
 0x157   :  { %321 = vmax.xlane.f32.xlu0 %v320_v36 }
 0x158   :  { %v304_v38 = vpop.f32.mrf.mxu2 }
 0x159   :  { %v308_v39 = vmul.f32 0.2, %v304_v38 }
 0x15b   :  { %v310_v41 = vmax.f32 %v304_v38, %v308_v39 }
 0x15d   :  { %v318_v42 = vsel %vm1091_vm4, %v310_v41, -1e+30 }
 0x15e   :  { %v323_v43 = vsel %vm319_vm3, %v318_v42, -inf }
 0x15f   :  { %324 = vmax.xlane.f32.xlu0 %v323_v43 }
 0x1ca   :  { %v322_v44 = vpop.xlane.xlu0 %321 }
 0x1cb   :  { %v326_v45 = vsub.f32 %v317_v35, %v322_v44 }
 0x1cd   :  { %v328_v46 = vmul.f32 1.442695, %v326_v45 }
 0x1cf   :  { %806 = vpow2.f32 %v328_v46 }
 0x1d2   :  { %v325_v47 = vpop.xlane.xlu0 %324 }
 0x1d3   :  { %v327_v48 = vsub.f32 %v318_v42, %v325_v47 }
 0x1d5   :  { %v807_v49 = vpop.eup %806  ;;  %v330_v50 = vmul.f32 1.442695, %v327_v48 }
 0x1d6   :  { %v332_v51 = vsel %vm319_vm3, %v807_v49, 0.0 }
 0x1d7   :  { %808 = vpow2.f32 %v330_v50  ;;  %333 = vadd.xlane.f32.xlu1 %v332_v51 }
 0x1dd   :  { %v809_v52 = vpop.eup %808 }
 0x1de   :  { %v335_v53 = vsel %vm319_vm3, %v809_v52, 0.0  ;;  %v338_v54 = vpack.c.bf16 %v809_v52, %v807_v49 }
 0x1df   :  { %336 = vadd.xlane.f32.xlu1 %v335_v53 }
 0x1e0   :  { %690 = vmatmul.msk.bf16.vlgmr.msra.gmra.mxu3 %vm319_vm3, %v338_v54 }
 0x24a   :  { %v334_v5 = vpop.xlane.xlu1 %333 }
 0x24b   :  { %810 = vrcp.f32 %v334_v5 }
 0x251   :  { %v811_v10 = vpop.eup %810 }
 0x252   :  { %v337_v8 = vpop.xlane.xlu1 %336 }
 0x253   :  { %812 = vrcp.f32 %v337_v8 }
 0x259   :  { %v813_v15 = vpop.eup %812 }
 0x263   :  { %v351_v11 = vpop.f32.mrf.mxu3 }
 0x264   :  { %v358_v12 = vmul.f32 %v811_v10, %v351_v11 }
 0x266   :  { %v363_v13 = vadd.f32 %v804_v9, %v358_v12 }
 0x268   :  { %v367_v14 = vmin.f32 %v363_v13, 0.0  ;;  %vm365_vm5 = vcmp.gt.f32.partialorder %v363_v13, 0.0 }
 0x26a   :  { %v369_v17 = vmul.f32 1.442695, %v367_v14 }
 0x26b   :  { %v353_v16 = vpop.f32.mrf.mxu3 }
 0x26c   :  { %v359_v18 = vmul.f32 %v813_v15, %v353_v16  ;;  %814 = vpow2.f32 %v369_v17 }
 0x26e   :  { %v364_v19 = vadd.f32 %v804_v9, %v359_v18 }
 0x270   :  { %v368_v20 = vmin.f32 %v364_v19, 0.0  ;;  %vm366_vm6 = vcmp.gt.f32.partialorder %v364_v19, 0.0 }
 0x272   :  { %v371_v21 = vmul.f32 1.442695, %v368_v20  ;;  %v815_v22 = vpop.eup %814 }
 0x273   :  { %v691_v23 = vadd.f32 -1.0, %v815_v22 }
 0x274   :  { %816 = vpow2.f32 %v371_v21 }
 0x275   :  { %v375_v26 = vsel %vm365_vm5, %v363_v13, %v691_v23 }
 0x27a   :  { %v817_v24 = vpop.eup %816 }
 0x27b   :  { %v692_v25 = vadd.f32 -1.0, %v817_v24 }
 0x27d   :  { %v376_v27 = vsel %vm366_vm6, %v364_v19, %v692_v25 }
 0x27e   :  { %v410_v28 = vpack.c.bf16 %v376_v27, %v375_v26 }
 0x280   :  { %467 = vmatmul.bf16.vlgmr.msrb.gmra.mxu3 %v410_v28  ;;  %529 = vmatmul.bf16.vlgmr.msrb.gmra.mxu2 %v410_v28 }
 0x303   :  { %v468_v29 = vpop.f32.mrf.mxu3  ;;  %v530_v30 = vpop.f32.mrf.mxu2 }
 0x30b   :  { %v470_v31 = vpop.f32.mrf.mxu3  ;;  %v532_v33 = vpop.f32.mrf.mxu2 }
 0x30c   :  { %v535_v34 = vpack.c.bf16 %v470_v31, %v468_v29  ;;  %v536_v35 = vpack.c.bf16 %v532_v33, %v530_v30 }
 0x30e   :  { %544 = vmatpush.bf16.xpose.msrb.mxu0 %v536_v35  ;;  %586 = vmatpush.bf16.msrb.mxu1 %v535_v34 }
 0x315   :  { %545 = vmatmul.bf16.vlgmr.msrb.gmra.mxu0 %v535_v34 }
 0x392   :  { %v546_v36 = vpop.f32.mrf.mxu0 }
 0x393   :  { %v551_v37 = vmul.f32 0.2, %v546_v36 }
 0x395   :  { %v553_v38 = vmax.f32 %v546_v36, %v551_v37 }
 0x397   :  { %v555_v39 = vsel %vm1084_vm2, %v553_v38, -1e+30 }
 0x398   :  { %v557_v41 = vsel %vm319_vm3, %v555_v39, -inf }
 0x399   :  { %558 = vmax.xlane.f32.xlu2 %v557_v41 }
 0x39a   :  { %v548_v42 = vpop.f32.mrf.mxu0 }
 0x39b   :  { %v552_v43 = vmul.f32 0.2, %v548_v42 }
 0x39d   :  { %v554_v44 = vmax.f32 %v548_v42, %v552_v43 }
 0x39f   :  { %v556_v45 = vsel %vm1091_vm4, %v554_v44, -1e+30 }
 0x3a0   :  { %v560_v46 = vsel %vm319_vm3, %v556_v45, -inf }
 0x3a1   :  { %561 = vmax.xlane.f32.xlu2 %v560_v46 }
 0x40c   :  { %v559_v47 = vpop.xlane.xlu2 %558 }
 0x40d   :  { %v563_v48 = vsub.f32 %v555_v39, %v559_v47 }
 0x40f   :  { %v565_v49 = vmul.f32 1.442695, %v563_v48 }
 0x411   :  { %818 = vpow2.f32 %v565_v49 }
 0x414   :  { %v562_v50 = vpop.xlane.xlu2 %561 }
 0x415   :  { %v564_v51 = vsub.f32 %v556_v45, %v562_v50 }
 0x417   :  { %v819_v32 = vpop.eup %818  ;;  %v567_v52 = vmul.f32 1.442695, %v564_v51 }
 0x418   :  { %v569_v53 = vsel %vm319_vm3, %v819_v32, 0.0 }
 0x419   :  { %820 = vpow2.f32 %v567_v52  ;;  %570 = vadd.xlane.f32.xlu0 %v569_v53 }
 0x41f   :  { %v821_v54 = vpop.eup %820 }
 0x420   :  { %v572_v55 = vsel %vm319_vm3, %v821_v54, 0.0  ;;  %v575_v40 = vpack.c.bf16 %v821_v54, %v819_v32 }
 0x421   :  { %573 = vadd.xlane.f32.xlu1 %v572_v55 }
 0x422   :  { %757 = vmatmul.msk.bf16.vlgmr.msrb.gmra.mxu1 %vm319_vm3, %v575_v40 }
 0x48c   :  { %v571_v56 = vpop.xlane.xlu0 %570 }
 0x48d   :  { %822 = vrcp.f32 %v571_v56 }
 0x493   :  { %v823_v59 = vpop.eup %822 }
 0x494   :  { %v574_v57 = vpop.xlane.xlu1 %573 }
 0x495   :  { %824 = vrcp.f32 %v574_v57 }
 0x49b   :  { %v825_v63 = vpop.eup %824 }
 0x49f   :  { %v588_v60 = vpop.f32.mrf.mxu1 }
 0x4a0   :  { %v595_v61 = vmul.f32 %v823_v59, %v588_v60 }
 0x4a2   :  { %v600_v62 = vadd.f32 %v805_v58, %v595_v61 }
 0x4a4   :  { %602 = vst [vmem:[#allocation13] sm:$0xff] %v600_v62 }
 0x4a7   :  { %v590_v0 = vpop.f32.mrf.mxu1 }
 0x4a8   :  { %v596_v1 = vmul.f32 %v825_v63, %v590_v0 }
 0x4aa   :  { %v601_v2 = vadd.f32 %v805_v58, %v596_v1 }
 0x4ac   :  { %603 = vst [vmem:[#allocation13 + $0x8] sm:$0xff] %v601_v2 }
 0x4ad   :  { %616 = dma.vmem_to_hbm [thread:$0]  %s609_s17, 256, %s611_s1, [#allocation4], %s1011_s3, %s1011_s3, %s1012_s26  }
 0x4ae   :  { %1002 = dma.done.wait [#allocation4], 256  }
 0x4af   :  { %1003 = vsyncadd [#allocation4], 4294967040 }
 0x4b0   :  { %621 = vsyncpa [#allocation3], 1 }
 0x4b1   :  { %622 = vsyncpa [#allocation6], 1 }
 0x4b2   :  { %623 = vsyncpa [#allocation9], 1 }
 0x4b3   :  { %624 = vsyncpa [#allocation12], 1 }
 0x4b4   :  { %625 = vsyncpa [#allocation4], 1 }

</bundles_post_ra>
